<compile_context>
chip_gen: v5e
topology: v5e:2x2
jax: 0.10.0
libtpu: 0.0.40
codegen_flags: <defaults>
</compile_context>

<pallas_src>
import functools

import jax
import jax.numpy as jnp
from jax.experimental import pallas as pl
from jax.experimental.pallas import tpu as pltpu


def _round_up(x, m):
    return ((x + m - 1) // m) * m


def _focal_loss_kernel(*refs, gamma, n_total, block_rows, has_alpha,
                       low_precision_exp):
    if has_alpha:
        logits_ref, tgt_ref, alpha_ref, out_ref = refs
    else:
        logits_ref, tgt_ref, out_ref = refs
        alpha_ref = None

    i = pl.program_id(0)

    x = logits_ref[...].astype(jnp.float32)                    # (TM, C)
    t = tgt_ref[...]                                           # (TM, 1) int32

    # One-hot(target), built once and reused for both the target-logit gather
    # and the in-kernel alpha gather (replaces the old padded alpha_t column).
    col = jax.lax.broadcasted_iota(jnp.int32, x.shape, 1)
    onehot = col == t                                          # (TM, C)

    tgt_logit = jnp.sum(jnp.where(onehot, x, 0.0), axis=1, keepdims=True)

    # Numerically stable CE: logp = logsumexp(x) - x[target].
    m = jnp.max(x, axis=1, keepdims=True)
    xm = x - m
    if low_precision_exp:
        # Optional v6e/v7x EUP-throughput path: bf16 exp, f32 accumulate.
        ex = jnp.exp(xm.astype(jnp.bfloat16)).astype(jnp.float32)
    else:
        ex = jnp.exp(xm)
    lse = m + jnp.log(jnp.sum(ex, axis=1, keepdims=True))
    logp = jnp.maximum(lse - tgt_logit, 0.0)                   # keeps 1 - p >= 0

    # Focal weight (1 - p)^gamma.
    p = jnp.exp(-logp)
    q = 1.0 - p
    g_int = int(gamma)
    if float(gamma) == float(g_int) and 1 <= g_int <= 32:
        # Square-and-multiply VALU chain (EUP stays free for the exp stream).
        w = None
        base = q
        e_exp = g_int
        while e_exp:
            if e_exp & 1:
                w = base if w is None else w * base
            e_exp >>= 1
            if e_exp:
                base = base * base
    elif float(gamma) == 0.0:
        w = jnp.ones_like(q)
    else:
        w = jnp.power(jnp.maximum(q, 0.0), gamma)              # EUP fallback

    loss = w * logp                                            # (TM, 1)

    if has_alpha:
        alpha_row = alpha_ref[...].astype(jnp.float32)         # (1, C), resident
        alpha_t = jnp.sum(jnp.where(onehot, alpha_row, 0.0), axis=1, keepdims=True)
        loss = loss * alpha_t

    # Mask rows past N (remainder tile).  The select happens after all math, so
    # inf/NaN from garbage padding rows never reaches the partial sum.
    row = jax.lax.broadcasted_iota(jnp.int32, loss.shape, 0)
    valid = (i * block_rows + row) < n_total
    loss = jnp.where(valid, loss, 0.0)

    # Per-block partial sum into a lane-dense (1, 8, 128) slab (every lane holds
    # the same value; the tiny final reduce happens in plain JAX).
    partial = jnp.sum(loss, axis=0, keepdims=True)             # (1, 1)
    out_ref[...] = jnp.broadcast_to(partial.reshape(1, 1, 1), out_ref.shape)


def _vmem_limits():
    """Generation-aware scoped-VMEM limit and per-tile budget (bytes)."""
    phys = 64 * 1024 * 1024                       # conservative default (v7x / TC)
    try:
        info = pltpu.get_tpu_info()
        for name in ("vmem_capacity_bytes", "vmem_bytes", "vmem_size_bytes"):
            cap = getattr(info, name, None)
            if cap:
                phys = int(cap)
                break
    except Exception:
        pass
    # ~40 MiB scoped on v7x (64 MiB per TC), ~80 MiB on v5e/v6e (128 MiB).
    limit = max(32 * 1024 * 1024, min((phys * 5) // 8, 80 * 1024 * 1024))
    tile_budget = (limit * 4) // 5 - 512 * 1024   # headroom: alpha row, out slab,
    return limit, tile_budget                     # compiler internal scratch


def _pick_block_rows(n_rows, n_cols, in_itemsize, tile_budget_bytes, *,
                     max_rows=32768):
    """Largest row tile whose *actual* live VMEM set fits the per-tile budget."""
    q = 16 if in_itemsize == 2 else 8                     # bf16 sublane packing
    c_pad = _round_up(n_cols, 128)                        # lane padding in VMEM
    per_row = (2 * c_pad * in_itemsize                    # double-buffered logits
               + 5 * c_pad * 4                            # f32 (TM,C) working set
               + 2 * 128 * 4                              # targets column, padded, x2
               + 6 * 128 * 4)                             # live (TM,1) f32 columns
    rows = tile_budget_bytes // per_row
    padded_n = _round_up(max(n_rows, 1), q)
    rows = max(q, min(max_rows, rows, padded_n))

    # Keep >= ~8 blocks for mid/large N so the "parallel" grid axis can
    # load-balance across v7x's two TensorCores (never below ~1024 rows).
    balance_rows = _round_up((padded_n + 7) // 8, q)
    rows = min(rows, max(balance_rows, min(padded_n, 1024)))
    return max(q, (rows // q) * q)


def focal_loss(logits, targets, *, gamma=2.0, alpha=None, reduction="mean",
               block_rows=None, low_precision_exp=False):
    """Pallas TPU focal loss forward.

    logits: (N, C) float32 or bfloat16 — prefer bf16: the kernel is HBM-bound
    and upcasts in-register, so halving input bytes is ~2x on v5e/v6e.
    targets: (N,) integer class ids.  Matches the PyTorch module exactly:
    returns loss.mean() for reduction='mean', otherwise loss.sum().
    """
    N, C = logits.shape
    itemsize = jnp.dtype(logits.dtype).itemsize
    vmem_limit, tile_budget = _vmem_limits()
    if block_rows is None:
        block_rows = _pick_block_rows(N, C, itemsize, tile_budget)
    q = 16 if itemsize == 2 else 8
    block_rows = max(q, (int(block_rows) // q) * q)
    num_blocks = (N + block_rows - 1) // block_rows

    tgt2d = targets.astype(jnp.int32).reshape(N, 1)
    # TODO(synk): pack targets lane-dense ((num_blocks, block_rows) + in-kernel
    # relayout) to drop the 128x lane padding of this column inside VMEM.

    has_alpha = alpha is not None
    operands = [logits, tgt2d]
    in_specs = [
        pl.BlockSpec((block_rows, C), lambda i: (i, 0)),        # logits tile
        pl.BlockSpec((block_rows, 1), lambda i: (i, 0)),        # targets column
    ]
    if has_alpha:
        alpha_row = jnp.asarray(alpha, jnp.float32).reshape(1, C)
        operands.append(alpha_row)
        in_specs.append(pl.BlockSpec((1, C), lambda i: (0, 0)))  # resident weights

    kernel = functools.partial(
        _focal_loss_kernel, gamma=float(gamma), n_total=N, block_rows=block_rows,
        has_alpha=has_alpha, low_precision_exp=bool(low_precision_exp))

    cost = pl.CostEstimate(
        flops=int((8 + (3 if has_alpha else 0)) * N * C),
        transcendentals=int(N * C + 3 * N),
        bytes_accessed=int(N * C * itemsize + N * 4 + (C * 4 if has_alpha else 0)
                           + num_blocks * 8 * 128 * 4),
    )

    partials = pl.pallas_call(
        kernel,
        out_shape=jax.ShapeDtypeStruct((num_blocks, 8, 128), jnp.float32),
        grid_spec=pltpu.PrefetchScalarGridSpec(
            num_scalar_prefetch=0,
            grid=(num_blocks,),
            in_specs=in_specs,
            out_specs=pl.BlockSpec((1, 8, 128), lambda i: (i, 0, 0)),
        ),
        compiler_params=pltpu.CompilerParams(
            dimension_semantics=("parallel",),                  # independent blocks
            vmem_limit_bytes=int(vmem_limit),
        ),
        cost_estimate=cost,
    )(*operands)

    total = jnp.sum(partials[:, 0, 0])
    if reduction == "mean":
        return total / jnp.float32(N)
    return total   # 'sum' (the reference module also sums for reduction='none')


def _focal_loss_ref(logits, targets, *, gamma=2.0, alpha=None, reduction="mean"):
    x = logits.astype(jnp.float32)
    lse = jax.nn.logsumexp(x, axis=1)
    logp = lse - jnp.take_along_axis(x, targets[:, None].astype(jnp.int32), axis=1)[:, 0]
    p = jnp.exp(-logp)
    loss = (1.0 - p) ** gamma * logp
    if alpha is not None:
        loss = loss * jnp.asarray(alpha, jnp.float32)[targets]
    return loss.mean() if reduction == "mean" else loss.sum()


if __name__ == "__main__":
    key = jax.random.PRNGKey(0)
    k1, k2, k3 = jax.random.split(key, 3)

    N, C = 16, 32
    logits = jax.random.normal(k1, (N, C), dtype=jnp.float32)
    targets = jax.random.randint(k2, (N,), 0, C, dtype=jnp.int32)
    alpha = jax.random.uniform(k3, (C,), dtype=jnp.float32) + 0.5

    # 1) mean reduction, alpha, integer gamma
    out = jax.block_until_ready(focal_loss(logits, targets, gamma=2.0, alpha=alpha,
                                           reduction="mean"))
    ref = _focal_loss_ref(logits, targets, gamma=2.0, alpha=alpha, reduction="mean")
    assert jnp.allclose(out, ref, rtol=1e-5, atol=1e-5), (out, ref)

    # 2) ragged N (remainder masking), sum reduction, non-integer gamma, no alpha
    N2 = 13
    logits2 = jax.random.normal(k1, (N2, C), dtype=jnp.float32)
    targets2 = jax.random.randint(k2, (N2,), 0, C, dtype=jnp.int32)
    out2 = jax.block_until_ready(
        focal_loss(logits2, targets2, gamma=1.5, alpha=None, reduction="sum"))
    ref2 = _focal_loss_ref(logits2, targets2, gamma=1.5, alpha=None, reduction="sum")
    assert jnp.allclose(out2, ref2, rtol=1e-5, atol=1e-5), (out2, ref2)

    # 3) bf16 logits (recommended HBM-bound input dtype), gamma=3 (square-and-multiply)
    logits3 = logits.astype(jnp.bfloat16)
    out3 = jax.block_until_ready(focal_loss(logits3, targets, gamma=3.0, alpha=alpha,
                                            reduction="mean"))
    ref3 = _focal_loss_ref(logits3, targets, gamma=3.0, alpha=alpha, reduction="mean")
    assert jnp.allclose(out3, ref3, rtol=1e-4, atol=1e-4), (out3, ref3)

    print("KERNEL_OK")
</pallas_src>

<mosaic_0001>
module attributes {stable_mosaic.version = 11 : i64} {
  func.func @_focal_loss_kernel(%arg0: i32, %arg1: memref<16x32xf32, #tpu.memory_space<vmem>>, %arg2: memref<16x1xi32, #tpu.memory_space<vmem>>, %arg3: memref<1x32xf32, #tpu.memory_space<vmem>>, %arg4: memref<1x8x128xf32, #tpu.memory_space<vmem>>) attributes {dimension_semantics = [#tpu.dimension_semantics<parallel>], iteration_bounds = array<i64: 1>, scalar_prefetch = 0 : i64, scratch_operands = 0 : i64, tpu.core_type = #tpu.core_type<tc>, window_params = [{transform_indices = @transform_0, window_bounds = array<i64: 16, 32>}, {transform_indices = @transform_1, window_bounds = array<i64: 16, 1>}, {pipeline_mode = #tpu.pipeline_mode<synchronous>, transform_indices = @transform_2, window_bounds = array<i64: 1, 32>}, {transform_indices = @transform_3, window_bounds = array<i64: 1, 8, 128>}]} {
    %c0 = arith.constant 0 : index
    %c0_0 = arith.constant 0 : index
    %0 = vector.load %arg1[%c0, %c0_0] : memref<16x32xf32, #tpu.memory_space<vmem>>, vector<16x32xf32>
    %c0_1 = arith.constant 0 : index
    %c0_2 = arith.constant 0 : index
    %1 = vector.load %arg2[%c0_1, %c0_2] : memref<16x1xi32, #tpu.memory_space<vmem>>, vector<16x1xi32>
    %2 = tpu.iota {dimensions = array<i32: 1>} : vector<16x32xi32>
    %3 = vector.broadcast %1 : vector<16x1xi32> to vector<16x32xi32>
    %4 = arith.cmpi eq, %2, %3 : vector<16x32xi32>
    %cst = arith.constant 0.000000e+00 : f32
    %5 = vector.broadcast %cst : f32 to vector<16x32xf32>
    %6 = arith.select %4, %0, %5 : vector<16x32xi1>, vector<16x32xf32>
    %cst_3 = arith.constant dense<0.000000e+00> : vector<16xf32>
    %7 = vector.multi_reduction <add>, %6, %cst_3 [1] : vector<16x32xf32> to vector<16xf32>
    %8 = vector.shape_cast %7 : vector<16xf32> to vector<16x1xf32>
    %cst_4 = arith.constant dense<0xFF800000> : vector<16xf32>
    %9 = vector.multi_reduction <maximumf>, %0, %cst_4 [1] : vector<16x32xf32> to vector<16xf32>
    %10 = vector.shape_cast %9 : vector<16xf32> to vector<16x1xf32>
    %11 = vector.broadcast %10 : vector<16x1xf32> to vector<16x32xf32>
    %12 = arith.subf %0, %11 : vector<16x32xf32>
    %13 = math.exp %12 : vector<16x32xf32>
    %cst_5 = arith.constant dense<0.000000e+00> : vector<16xf32>
    %14 = vector.multi_reduction <add>, %13, %cst_5 [1] : vector<16x32xf32> to vector<16xf32>
    %15 = vector.shape_cast %14 : vector<16xf32> to vector<16x1xf32>
    %16 = math.log %15 : vector<16x1xf32>
    %17 = arith.addf %10, %16 : vector<16x1xf32>
    %18 = arith.subf %17, %8 : vector<16x1xf32>
    %cst_6 = arith.constant 0.000000e+00 : f32
    %19 = vector.broadcast %cst_6 : f32 to vector<16x1xf32>
    %20 = arith.maximumf %18, %19 : vector<16x1xf32>
    %cst_7 = arith.constant 0.000000e+00 : f32
    %21 = vector.broadcast %cst_7 : f32 to vector<16x1xf32>
    %22 = arith.subf %21, %20 : vector<16x1xf32>
    %23 = math.exp %22 : vector<16x1xf32>
    %cst_8 = arith.constant 1.000000e+00 : f32
    %24 = vector.broadcast %cst_8 : f32 to vector<16x1xf32>
    %25 = arith.subf %24, %23 : vector<16x1xf32>
    %26 = arith.mulf %25, %25 : vector<16x1xf32>
    %27 = arith.mulf %26, %20 : vector<16x1xf32>
    %c0_9 = arith.constant 0 : index
    %c0_10 = arith.constant 0 : index
    %28 = vector.load %arg3[%c0_9, %c0_10] : memref<1x32xf32, #tpu.memory_space<vmem>>, vector<1x32xf32>
    %cst_11 = arith.constant 0.000000e+00 : f32
    %29 = vector.shape_cast %28 : vector<1x32xf32> to vector<1x32xf32>
    %30 = vector.broadcast %29 : vector<1x32xf32> to vector<16x32xf32>
    %31 = vector.broadcast %cst_11 : f32 to vector<16x32xf32>
    %32 = arith.select %4, %30, %31 : vector<16x32xi1>, vector<16x32xf32>
    %cst_12 = arith.constant dense<0.000000e+00> : vector<16xf32>
    %33 = vector.multi_reduction <add>, %32, %cst_12 [1] : vector<16x32xf32> to vector<16xf32>
    %34 = vector.shape_cast %33 : vector<16xf32> to vector<16x1xf32>
    %35 = arith.mulf %27, %34 : vector<16x1xf32>
    %36 = tpu.iota {dimensions = array<i32: 0>} : vector<16x1xi32>
    %c16_i32 = arith.constant 16 : i32
    %37 = arith.muli %arg0, %c16_i32 : i32
    %38 = vector.broadcast %37 : i32 to vector<16x1xi32>
    %39 = arith.addi %38, %36 : vector<16x1xi32>
    %c16_i32_13 = arith.constant 16 : i32
    %40 = vector.broadcast %c16_i32_13 : i32 to vector<16x1xi32>
    %41 = arith.cmpi slt, %39, %40 : vector<16x1xi32>
    %cst_14 = arith.constant 0.000000e+00 : f32
    %42 = vector.broadcast %cst_14 : f32 to vector<16x1xf32>
    %43 = arith.select %41, %35, %42 : vector<16x1xi1>, vector<16x1xf32>
    %cst_15 = arith.constant dense<0.000000e+00> : vector<1xf32>
    %44 = vector.multi_reduction <add>, %43, %cst_15 [0] : vector<16x1xf32> to vector<1xf32>
    %45 = vector.shape_cast %44 : vector<1xf32> to vector<1x1xf32>
    %46 = vector.shape_cast %45 : vector<1x1xf32> to vector<1x1x1xf32>
    %47 = vector.shape_cast %46 : vector<1x1x1xf32> to vector<1x1x1xf32>
    %48 = vector.broadcast %47 : vector<1x1x1xf32> to vector<1x8x128xf32>
    %c0_16 = arith.constant 0 : index
    %c0_17 = arith.constant 0 : index
    %c0_18 = arith.constant 0 : index
    %49 = vector.load %arg4[%c0_16, %c0_17, %c0_18] : memref<1x8x128xf32, #tpu.memory_space<vmem>>, vector<1x8x128xf32>
    tpu.vector_store %arg4[%c0_16, %c0_17, %c0_18], %48 {strides = array<i32>} : memref<1x8x128xf32, #tpu.memory_space<vmem>>, vector<1x8x128xf32>,
    return
  }
  func.func @transform_0(%arg0: i32) -> (i32, i32) {
    %c0_i32 = arith.constant 0 : i32
    %c0_i32_0 = arith.constant 0 : i32
    return %arg0, %c0_i32 : i32, i32
  }
  func.func @transform_1(%arg0: i32) -> (i32, i32) {
    %c0_i32 = arith.constant 0 : i32
    %c0_i32_0 = arith.constant 0 : i32
    return %arg0, %c0_i32 : i32, i32
  }
  func.func @transform_2(%arg0: i32) -> (i32, i32) {
    %c0_i32 = arith.constant 0 : i32
    %c0_i32_0 = arith.constant 0 : i32
    %c0_i32_1 = arith.constant 0 : i32
    return %c0_i32, %c0_i32_0 : i32, i32
  }
  func.func @transform_3(%arg0: i32) -> (i32, i32, i32) {
    %c0_i32 = arith.constant 0 : i32
    %c0_i32_0 = arith.constant 0 : i32
    %c0_i32_1 = arith.constant 0 : i32
    return %arg0, %c0_i32, %c0_i32_0 : i32, i32, i32
  }
}

</mosaic_0001>

<bundles_post_ra>
// kernel: tpu_custom_call.1
= control target key start
LH: loop header
LB: loop body
LE: loop exit
PB: predicated region body
PF: predicated region fallthrough
CT: control target
= control target key end

     0   :  { %vm31_vm0 = vcmask 261120   ;;  %v170_v3 = vmov 0   ;;  %s220_s0 = inlined_call_operand.vmem [shape: f32[16,32], index: 0, kind: input, shape index: {}]   ;;  %s221_s1 = inlined_call_operand.vmem [shape: s32[16,1], index: 1, kind: input, shape index: {}]   ;;  %s222_s2 = inlined_call_operand.vmem [shape: f32[1,32], index: 2, kind: input, shape index: {}]   ;;  %s223_s3 = inlined_call_operand.hbm [shape: f32[1,8,128], index: 3, kind: output, shape index: {}]  }
   0x1   :  { %v15_v0 = vld [vmem:[%s220_s0] sm:$0xff]  ;;  %129 = vset.pattern.permute.xlu1 %v170_v3  ;;  %130 = vset.pattern.permute.xlu0 %v170_v3 }
   0x2   :  { %v17_v1 = vld [vmem:[%s221_s1] sm:$0xff]  ;;  %v38_v2 = vsel %vm31_vm0, %v15_v0, -inf }
   0x3   :  { %39 = vmax.xlane.f32.xlu0 %v38_v2  ;;  %22 = vperm.xlu1 %129, %v17_v1  }
   0x4   :  { %8 = vsyncpa [#allocation3], 0  ;;  %v16_v4 = vld [vmem:[%s220_s0 + $0x8] sm:$0xff]  ;;  %v19_v7 = vlaneseq  ;;  %v131_v15 = vld [vmem:[%s222_s2] ss:$0 sm:$0xff]  ;;  %s118_s23 = sshll.u32 %s223_s3, 4  ;;  %s119_s23 = int_to_ptr.hbm [resolvable:$true] %s118_s23 }
   0x5   :  { %v41_v5 = vsel %vm31_vm0, %v16_v4, -inf  ;;  %v18_v6 = vld [vmem:[%s221_s1 + $0x8] sm:$0xff]  ;;  %s171_s1 = smov [#allocation2]  }
   0x6   :  { %v20_v8 = vand.u32 127, %v19_v7  ;;  %s116_s2 = sshll.u32 %s171_s1, 4  ;;  %s117_s2 = int_to_ptr.vmem [resolvable:$true] %s116_s2 }
   0xb   :  { %42 = vmax.xlane.f32.xlu0 %v41_v5  ;;  %25 = vperm.xlu1 %129, %v18_v6  }
  0x75   :  { %v23_v9 = vpop.permute.xlu1 %22 }
  0x76   :  { %v40_v10 = vpop.xlane.xlu0 %39  ;;  %vm27_vm1 = vcmp.eq.s32.totalorder %v20_v8, %v23_v9 }
  0x77   :  { %v44_v11 = vsub.f32 %v15_v0, %v40_v10  ;;  %v29_v12 = vsel %vm27_vm1, %v15_v0, 0.0  ;;  %v82_v28 = vsel %vm27_vm1, %v131_v15, 0.0 }
  0x78   :  { %v32_v13 = vsel %vm31_vm0, %v29_v12, 0.0  ;;  %v84_v29 = vsel %vm31_vm0, %v82_v28, 0.0 }
  0x79   :  { %v46_v14 = vmul.f32 1.442695, %v44_v11  ;;  %33 = vadd.xlane.f32.xlu0 %v32_v13 }
  0x7b   :  { %132 = vpow2.f32 %v46_v14 }
  0x7d   :  { %v26_v16 = vpop.permute.xlu1 %25 }
  0x7e   :  { %v43_v17 = vpop.xlane.xlu0 %42  ;;  %vm28_vm2 = vcmp.eq.s32.totalorder %v20_v8, %v26_v16 }
  0x7f   :  { %v45_v18 = vsub.f32 %v16_v4, %v43_v17  ;;  %v30_v19 = vsel %vm28_vm2, %v16_v4, 0.0  ;;  %v83_v20 = vsel %vm28_vm2, %v131_v15, 0.0 }
  0x80   :  { %v35_v21 = vsel %vm31_vm0, %v30_v19, 0.0  ;;  %v87_v22 = vsel %vm31_vm0, %v83_v20, 0.0 }
  0x81   :  { %v133_v23 = vpop.eup %132  ;;  %v48_v24 = vmul.f32 1.442695, %v45_v18  ;;  %36 = vadd.xlane.f32.xlu1 %v35_v21  ;;  %88 = vadd.xlane.f32.xlu0 %v87_v22 }
  0x82   :  { %v50_v25 = vsel %vm31_vm0, %v133_v23, 0.0 }
  0x83   :  { %134 = vpow2.f32 %v48_v24  ;;  %51 = vadd.xlane.f32.xlu2 %v50_v25 }
  0x89   :  { %v135_v26 = vpop.eup %134 }
  0x8a   :  { %v53_v27 = vsel %vm31_vm0, %v135_v26, 0.0 }
  0x8b   :  { %54 = vadd.xlane.f32.xlu2 %v53_v27 }
  0x93   :  { %85 = vadd.xlane.f32.xlu2 %v84_v29 }
  0xec   :  { %v34_v35 = vpop.xlane.xlu0 %33 }
  0xf4   :  { %v37_v43 = vpop.xlane.xlu1 %36  ;;  %v89_v56 = vpop.xlane.xlu0 %88 }
  0xf6   :  { %v52_v30 = vpop.xlane.xlu2 %51 }
  0xf7   :  { %136 = vlog2.f32 %v52_v30 }
  0xfd   :  { %v137_v31 = vpop.eup %136 }
  0xfe   :  { %v57_v32 = vmul.f32 0.6931472, %v137_v31  ;;  %v55_v33 = vpop.xlane.xlu2 %54 }
  0xff   :  { %138 = vlog2.f32 %v55_v33 }
 0x100   :  { %v60_v34 = vadd.f32 %v57_v32, %v40_v10 }
 0x102   :  { %v62_v36 = vsub.f32 %v60_v34, %v34_v35 }
 0x104   :  { %v64_v37 = vmax.f32 %v62_v36, 0.0 }
 0x105   :  { %v139_v38 = vpop.eup %138 }
 0x106   :  { %v66_v39 = vsub.f32 0.0, %v64_v37  ;;  %v59_v40 = vmul.f32 0.6931472, %v139_v38  ;;  %v86_v57 = vpop.xlane.xlu2 %85 }
 0x108   :  { %v68_v41 = vmul.f32 1.442695, %v66_v39  ;;  %v61_v42 = vadd.f32 %v59_v40, %v43_v17 }
 0x10a   :  { %140 = vpow2.f32 %v68_v41  ;;  %v63_v44 = vsub.f32 %v61_v42, %v37_v43 }
 0x10c   :  { %v65_v45 = vmax.f32 %v63_v44, 0.0 }
 0x10e   :  { %v67_v46 = vsub.f32 0.0, %v65_v45 }
 0x110   :  { %v141_v47 = vpop.eup %140  ;;  %v70_v48 = vmul.f32 1.442695, %v67_v46 }
 0x111   :  { %v72_v49 = vsub.f32 1.0, %v141_v47 }
 0x112   :  { %142 = vpow2.f32 %v70_v48 }
 0x113   :  { %v74_v50 = vmul.f32 %v72_v49, %v72_v49 }
 0x115   :  { %v76_v54 = vmul.f32 %v74_v50, %v64_v37 }
 0x117   :  { %v90_v59 = vmul.f32 %v86_v57, %v76_v54 }
 0x118   :  { %v143_v51 = vpop.eup %142 }
 0x119   :  { %v73_v52 = vsub.f32 1.0, %v143_v51 }
 0x11b   :  { %v75_v53 = vmul.f32 %v73_v52, %v73_v52 }
 0x11d   :  { %v77_v55 = vmul.f32 %v75_v53, %v65_v45 }
 0x11f   :  { %v91_v58 = vmul.f32 %v89_v56, %v77_v55 }
 0x121   :  { %v103_v60 = vadd.f32 %v91_v58, %v90_v59 }
 0x123   :  { %v104_v61 = vrot.slane %v103_v60, 4 }
 0x125   :  { %v105_v62 = vadd.f32 %v104_v61, %v103_v60 }
 0x127   :  { %v106_v63 = vrot.slane %v105_v62, 2 }
 0x129   :  { %v107_v0 = vadd.f32 %v106_v63, %v105_v62 }
 0x12b   :  { %v108_v1 = vrot.slane %v107_v0, 1 }
 0x12d   :  { %v109_v2 = vadd.f32 %v108_v1, %v107_v0 }
 0x12f   :  { %110 = vst [vmem:[#allocation2] sm:$0xff] %v109_v2 }
 0x130   :  { %121 = dma.vmem_to_hbm [thread:$0]  %s117_s2, 128, %s119_s23, [#allocation3]  }
 0x131   :  { %168 = dma.done.wait [#allocation3], 128  }
 0x132   :  { %169 = vsyncadd [#allocation3], 4294967168 }
 0x133   :  { %126 = vsyncpa [#allocation3], 1 }

</bundles_post_ra>
